<compile_context>
chip_gen: v6e
topology: v6e:2x2x1
jax: 0.10.0
libtpu: 0.0.40
codegen_flags: <defaults>
</compile_context>

<pallas_src>
import functools

import jax
import jax.numpy as jnp
from jax.experimental import pallas as pl
from jax.experimental.pallas import tpu as pltpu


def _hamming_kernel(logits_ref, labels_ref, thresh_ref, out_ref, *,
                    batch, batch_tile, tiles_per_shard, needs_row_mask):
    """Accumulate sublane-folded mismatch counts into the resident (8, tl) out block."""
    c = pl.program_id(0)   # shard axis (parallel)
    i = pl.program_id(1)   # batch-tile axis (reduction)
    j = pl.program_id(2)   # label-tile axis (reduction)

    @pl.when(jnp.logical_and(i == 0, j == 0))
    def _():
        out_ref[...] = jnp.zeros_like(out_ref)

    thresh = thresh_ref[...]                                # (8, tl) f32, sublane-dense
    acc = jnp.zeros(out_ref.shape, jnp.float32)             # (8, tl), lives in vregs

    if needs_row_mask:
        row0 = ((c * tiles_per_shard + i) * batch_tile
                + jax.lax.broadcasted_iota(jnp.int32, (8, 1), 0))

    # Fold batch_tile rows into 8 sublanes: one vreg-wise compare+add per 8-row group.
    for k in range(batch_tile // 8):
        x = logits_ref[pl.ds(k * 8, 8), :]                   # (8, tl) native dtype
        y = labels_ref[pl.ds(k * 8, 8), :] != 0              # labels {0,1} -> bool
        mism = ((x >= thresh) != y).astype(jnp.float32)      # VPU only
        if needs_row_mask:
            mism = jnp.where(row0 + k * 8 < batch, mism, 0.0)  # drop zero-padded rows
        acc = acc + mism

    out_ref[...] += acc


def _round_up(x, m):
    return ((x + m - 1) // m) * m


def _tpu_vmem_capacity_bytes(default=64 * 1024 * 1024):
    try:
        return int(pltpu.get_tpu_info().vmem_capacity_bytes)
    except Exception:
        return default  # conservative (v7x per-core) fallback


def _num_tensorcores():
    """Best-effort TensorCore count (2 on v7x); defaults to 1 (v5e/v6e behaviour)."""
    try:
        info = pltpu.get_tpu_info()
        for attr in ("num_cores", "core_count", "num_tensorcores", "tensorcore_count"):
            v = getattr(info, attr, None)
            if v:
                return max(1, int(v))
    except Exception:
        pass
    try:
        d = jax.devices()[0]
        for attr in ("num_cores", "core_count"):
            v = getattr(d, attr, None)
            if v:
                return max(1, int(v))
    except Exception:
        pass
    return 1


def _pick_label_tile(num_labels, stream_bytes_per_elem, vmem_budget, target_bt=128):
    """Full-L rows unless that would force tiny batch tiles; else a 128-multiple
    label tile that divides L so batch tiles can stay >= target_bt rows."""
    if target_bt * num_labels * stream_bytes_per_elem <= vmem_budget:
        return num_labels
    if num_labels % 128 != 0:
        # TODO(synk): pad the label axis to a 128-multiple so huge, unaligned L can
        # also be tiled; fall back to full-L rows for now.
        return num_labels
    tl = (vmem_budget // (target_bt * stream_bytes_per_elem)) // 128 * 128
    tl = max(128, min(tl, num_labels))
    while num_labels % tl != 0:
        tl -= 128
    return tl


def _pick_batch_tile(batch, bytes_per_row, min_sublane, vmem_budget):
    """Largest VMEM-budgeted batch tile (multiple of dtype sublane packing);
    prefers >= 4 reduction steps so the DMA pipeline can double-buffer."""
    fits = [c for c in (1024, 512, 256, 128, 64, 32, 16, 8)
            if c >= min_sublane and c % min_sublane == 0
            and c * bytes_per_row <= vmem_budget]
    if not fits:
        return min_sublane
    for bt in fits:                      # descending
        if -(-batch // bt) >= 4:
            return bt
    return min(fits[0], _round_up(batch, min_sublane))


def multilabel_hamming_loss(logits, labels, probs_switcher):
    """logits: (B, L) float; labels: (B, L) with values in {0, 1} in ANY dtype
    (store/pass them as int8 or bool for lowest HBM traffic -- no cast is done here);
    probs_switcher: (L,) probabilities. Returns scalar f32 Hamming loss."""
    B, L = logits.shape
    assert labels.shape == (B, L), (labels.shape, (B, L))
    assert probs_switcher.shape[-1] == L

    # Fold the monotone sigmoid into the threshold: sigmoid(x) >= p  <=>  x >= logit(p).
    p = probs_switcher.reshape(L).astype(jnp.float32)
    thr = jnp.log(p) - jnp.log1p(-p)                       # p->0 gives -inf, p->1 gives +inf
    thresh = jnp.broadcast_to(thr.reshape(1, L), (8, L))   # sublane-dense threshold operand

    # Generation-aware VMEM budgeting (v7x has half the VMEM of v5e/v6e).
    vmem_cap = _tpu_vmem_capacity_bytes()
    vmem_budget = min(vmem_cap // 4, 20 * 1024 * 1024)
    vmem_limit = int(min(vmem_cap // 2, 48 * 1024 * 1024))

    # Double-buffered streaming bytes per element (logits + labels, native dtypes).
    stream_bytes = 2 * (logits.dtype.itemsize + labels.dtype.itemsize)
    tl = _pick_label_tile(L, stream_bytes, vmem_budget)
    # Sublane packing: f32 -> 8 rows, bf16 -> 16, int8/bool -> 32.
    min_sublane = max(32 // min(logits.dtype.itemsize, 4),
                      32 // min(labels.dtype.itemsize, 4))
    bt = _pick_batch_tile(B, tl * stream_bytes, min_sublane, vmem_budget)

    # Shard axis only helps on multi-TensorCore chips (v7x); pad B so it always exists there.
    num_shards = 2 if _num_tensorcores() >= 2 else 1
    b_pad = _round_up(B, bt * num_shards)
    needs_row_mask = (b_pad != B)
    if needs_row_mask:
        logits = jnp.pad(logits, ((0, b_pad - B), (0, 0)))
        labels = jnp.pad(labels, ((0, b_pad - B), (0, 0)))
    tiles_per_shard = b_pad // bt // num_shards
    label_tiles = L // tl
    grid = (num_shards, tiles_per_shard, label_tiles)

    kernel = functools.partial(
        _hamming_kernel, batch=B, batch_tile=bt,
        tiles_per_shard=tiles_per_shard, needs_row_mask=needs_row_mask)

    cost = pl.CostEstimate(
        flops=4 * b_pad * L,
        transcendentals=0,
        bytes_accessed=(b_pad * L * (logits.dtype.itemsize + labels.dtype.itemsize)
                        + 8 * L * 4 + num_shards * 8 * tl * 4),
    )

    partials = pl.pallas_call(
        kernel,
        out_shape=jax.ShapeDtypeStruct((num_shards * 8, tl), jnp.float32),
        grid_spec=pltpu.PrefetchScalarGridSpec(
            num_scalar_prefetch=0,
            grid=grid,
            in_specs=[
                pl.BlockSpec((bt, tl), lambda c, i, j: (c * tiles_per_shard + i, j)),  # logits
                pl.BlockSpec((bt, tl), lambda c, i, j: (c * tiles_per_shard + i, j)),  # labels
                pl.BlockSpec((8, tl), lambda c, i, j: (0, j)),                         # thresholds
            ],
            out_specs=pl.BlockSpec((8, tl), lambda c, i, j: (c, 0)),  # per-shard folded accumulator
        ),
        compiler_params=pltpu.CompilerParams(
            dimension_semantics=("parallel", "arbitrary", "arbitrary"),
            vmem_limit_bytes=vmem_limit,
        ),
        cost_estimate=cost,
    )(logits, labels, thresh)

    # Final cross-lane/sublane reduce + normalization in XLA (off the kernel's tail).
    return jnp.sum(partials) / jnp.float32(B * L)


if __name__ == "__main__":
    key = jax.random.PRNGKey(0)
    k1, k2, k3, k4 = jax.random.split(key, 4)

    # Small demo shapes consistent with the module: batch=64, num_labels=128.
    B, L = 64, 128
    logits = jax.random.normal(k1, (B, L), dtype=jnp.float32)
    labels = (jax.random.uniform(k2, (B, L)) > 0.5).astype(jnp.float32)  # {0,1}, PyTorch-style
    probs_switcher = jax.random.uniform(k3, (L,), minval=0.2, maxval=0.8).astype(jnp.float32)

    loss = jax.block_until_ready(multilabel_hamming_loss(logits, labels, probs_switcher))

    # Exact reference for the kernel's logit-space compare.
    thr = jnp.log(probs_switcher) - jnp.log1p(-probs_switcher)
    preds = (logits >= thr[None, :]).astype(jnp.float32)
    ref_exact = jnp.mean(jnp.sum((preds != labels).astype(jnp.float32), axis=1) / L)
    assert jnp.allclose(loss, ref_exact, atol=1e-6), (loss, ref_exact)

    # PyTorch-semantics reference (sigmoid + prob-space thresholds). Identical up to
    # possible 1-ulp boundary ties, so allow a tolerance of one flipped element.
    probs = jax.nn.sigmoid(logits)
    preds_t = (probs >= probs_switcher[None, :]).astype(jnp.float32)
    ref_torch = jnp.mean(jnp.sum((preds_t != labels).astype(jnp.float32), axis=1) / L)
    assert jnp.allclose(loss, ref_torch, atol=2.0 / (B * L)), (loss, ref_torch)

    # Second run: ragged batch (masked tail tile) + int8 labels (bandwidth-friendly path).
    B2 = 52
    logits2 = jax.random.normal(k4, (B2, L), dtype=jnp.float32)
    labels2 = (jax.random.uniform(k2, (B2, L)) > 0.5).astype(jnp.int8)
    loss2 = jax.block_until_ready(multilabel_hamming_loss(logits2, labels2, probs_switcher))
    preds2 = (logits2 >= thr[None, :]).astype(jnp.float32)
    ref2 = jnp.mean(
        jnp.sum((preds2 != labels2.astype(jnp.float32)).astype(jnp.float32), axis=1) / L)
    assert jnp.allclose(loss2, ref2, atol=1e-6), (loss2, ref2)

    print("KERNEL_OK")
</pallas_src>

<mosaic_0001>
module attributes {stable_mosaic.version = 11 : i64} {
  func.func @_hamming_kernel(%arg0: i32, %arg1: i32, %arg2: i32, %arg3: memref<16x128xf32, #tpu.memory_space<vmem>>, %arg4: memref<16x128xf32, #tpu.memory_space<vmem>>, %arg5: memref<8x128xf32, #tpu.memory_space<vmem>>, %arg6: memref<8x128xf32, #tpu.memory_space<vmem>>) attributes {dimension_semantics = [#tpu.dimension_semantics<parallel>, #tpu.dimension_semantics<arbitrary>, #tpu.dimension_semantics<arbitrary>], iteration_bounds = array<i64: 1, 4, 1>, scalar_prefetch = 0 : i64, scratch_operands = 0 : i64, tpu.core_type = #tpu.core_type<tc>, window_params = [{transform_indices = @transform_0, window_bounds = array<i64: 16, 128>}, {transform_indices = @transform_1, window_bounds = array<i64: 16, 128>}, {transform_indices = @transform_2, window_bounds = array<i64: 8, 128>}, {transform_indices = @transform_3, window_bounds = array<i64: 8, 128>}]} {
    %c0_i32 = arith.constant 0 : i32
    %0 = arith.cmpi eq, %arg1, %c0_i32 : i32
    %c0_i32_0 = arith.constant 0 : i32
    %1 = arith.cmpi eq, %arg2, %c0_i32_0 : i32
    %2 = arith.andi %0, %1 : i1
    %3 = arith.extui %2 : i1 to i32
    %c0_i32_1 = arith.constant 0 : i32
    %4 = arith.cmpi ne, %3, %c0_i32_1 : i32
    scf.if %4 {
      %cst_16 = arith.constant 0.000000e+00 : f32
      %28 = vector.broadcast %cst_16 : f32 to vector<8x128xf32>
      %c0_17 = arith.constant 0 : index
      %c0_18 = arith.constant 0 : index
      %29 = vector.load %arg6[%c0_17, %c0_18] : memref<8x128xf32, #tpu.memory_space<vmem>>, vector<8x128xf32>
      tpu.vector_store %arg6[%c0_17, %c0_18], %28 {strides = array<i32>} : memref<8x128xf32, #tpu.memory_space<vmem>>, vector<8x128xf32>,
    } else {
    }
    %c0 = arith.constant 0 : index
    %c0_2 = arith.constant 0 : index
    %5 = vector.load %arg5[%c0, %c0_2] : memref<8x128xf32, #tpu.memory_space<vmem>>, vector<8x128xf32>
    %cst = arith.constant 0.000000e+00 : f32
    %6 = vector.broadcast %cst : f32 to vector<8x128xf32>
    %c0_3 = arith.constant 0 : index
    %c0_4 = arith.constant 0 : index
    %7 = vector.load %arg3[%c0_3, %c0_4] : memref<16x128xf32, #tpu.memory_space<vmem>>, vector<8x128xf32>
    %c0_5 = arith.constant 0 : index
    %c0_6 = arith.constant 0 : index
    %8 = vector.load %arg4[%c0_5, %c0_6] : memref<16x128xf32, #tpu.memory_space<vmem>>, vector<8x128xf32>
    %cst_7 = arith.constant 0.000000e+00 : f32
    %9 = vector.broadcast %cst_7 : f32 to vector<8x128xf32>
    %10 = arith.cmpf one, %8, %9 : vector<8x128xf32>
    %11 = arith.cmpf oge, %7, %5 : vector<8x128xf32>
    %12 = arith.xori %11, %10 : vector<8x128xi1>
    %13 = arith.extui %12 : vector<8x128xi1> to vector<8x128xi32>
    %14 = arith.sitofp %13 : vector<8x128xi32> to vector<8x128xf32>
    %15 = arith.addf %6, %14 : vector<8x128xf32>
    %c8 = arith.constant 8 : index
    %c0_8 = arith.constant 0 : index
    %16 = vector.load %arg3[%c8, %c0_8] : memref<16x128xf32, #tpu.memory_space<vmem>>, vector<8x128xf32>
    %c8_9 = arith.constant 8 : index
    %c0_10 = arith.constant 0 : index
    %17 = vector.load %arg4[%c8_9, %c0_10] : memref<16x128xf32, #tpu.memory_space<vmem>>, vector<8x128xf32>
    %cst_11 = arith.constant 0.000000e+00 : f32
    %18 = vector.broadcast %cst_11 : f32 to vector<8x128xf32>
    %19 = arith.cmpf one, %17, %18 : vector<8x128xf32>
    %20 = arith.cmpf oge, %16, %5 : vector<8x128xf32>
    %21 = arith.xori %20, %19 : vector<8x128xi1>
    %22 = arith.extui %21 : vector<8x128xi1> to vector<8x128xi32>
    %23 = arith.sitofp %22 : vector<8x128xi32> to vector<8x128xf32>
    %24 = arith.addf %15, %23 : vector<8x128xf32>
    %c0_12 = arith.constant 0 : index
    %c0_13 = arith.constant 0 : index
    %25 = vector.load %arg6[%c0_12, %c0_13] : memref<8x128xf32, #tpu.memory_space<vmem>>, vector<8x128xf32>
    %26 = arith.addf %25, %24 : vector<8x128xf32>
    %c0_14 = arith.constant 0 : index
    %c0_15 = arith.constant 0 : index
    %27 = vector.load %arg6[%c0_14, %c0_15] : memref<8x128xf32, #tpu.memory_space<vmem>>, vector<8x128xf32>
    tpu.vector_store %arg6[%c0_14, %c0_15], %26 {strides = array<i32>} : memref<8x128xf32, #tpu.memory_space<vmem>>, vector<8x128xf32>,
    return
  }
  func.func @transform_0(%arg0: i32, %arg1: i32, %arg2: i32) -> (i32, i32) {
    %c4_i32 = arith.constant 4 : i32
    %0 = arith.muli %arg0, %c4_i32 : i32
    %1 = arith.addi %0, %arg1 : i32
    %c0_i32 = arith.constant 0 : i32
    return %1, %arg2 : i32, i32
  }
  func.func @transform_1(%arg0: i32, %arg1: i32, %arg2: i32) -> (i32, i32) {
    %c4_i32 = arith.constant 4 : i32
    %0 = arith.muli %arg0, %c4_i32 : i32
    %1 = arith.addi %0, %arg1 : i32
    %c0_i32 = arith.constant 0 : i32
    return %1, %arg2 : i32, i32
  }
  func.func @transform_2(%arg0: i32, %arg1: i32, %arg2: i32) -> (i32, i32) {
    %c0_i32 = arith.constant 0 : i32
    %c0_i32_0 = arith.constant 0 : i32
    return %c0_i32, %arg2 : i32, i32
  }
  func.func @transform_3(%arg0: i32, %arg1: i32, %arg2: i32) -> (i32, i32) {
    %c0_i32 = arith.constant 0 : i32
    %c0_i32_0 = arith.constant 0 : i32
    return %arg0, %c0_i32 : i32, i32
  }
}

</mosaic_0001>

<bundles_post_ra>
// kernel: tpu_custom_call.1
= control target key start
LH: loop header
LB: loop body
LE: loop exit
PB: predicated region body
PF: predicated region fallthrough
CT: control target
= control target key end

     0   :  { %s883_s0 = inlined_call_operand.hbm [shape: f32[64,128], index: 0, kind: input, shape index: {}]   ;;  %s884_s1 = inlined_call_operand.hbm [shape: f32[64,128], index: 1, kind: input, shape index: {}]   ;;  %s885_s2 = inlined_call_operand.hbm [shape: f32[8,128], index: 2, kind: input, shape index: {}]   ;;  %s886_s3 = inlined_call_operand.hbm [shape: f32[8,128], index: 3, kind: output, shape index: {}]  }
   0x1   :  { %889 = sst [smem:[#allocation13_spill]] %s883_s0 }
   0x2   :  { %8 = vsyncpa [#allocation3], 0 }
   0x3   :  { %10 = vsyncpa [#allocation3 + $0x1], 0 }
   0x4   :  { %11 = vsyncpa [#allocation6], 0 }
   0x5   :  { %13 = vsyncpa [#allocation6 + $0x1], 0 }
   0x6   :  { %14 = vsyncpa [#allocation4], 0  ;;  %s730_s12 = smov 0   ;;  %s732_s13 = smov 0  }
   0x7   :  { %s734_s14 = smov 0   ;;  %s736_s15 = smov 0  }
   0x8   :  { %s738_s16 = smov 0   ;;  %s740_s17 = smov 0  }
   0x9 LB: > { %s759_s18 = sadd.s32 4294967295, %s700_s17   ;;  %s52_s19 = sadd.s32 1, %s688_s14  ;;  %s700_s17 = sphi %s740_s17, %s20_s17   ;;  %s696_s16 = sphi %s738_s16, %s901_s16   ;;  %s692_s15 = sphi %s736_s15, %s900_s15   ;;  %s688_s14 = sphi %s734_s14, %s899_s14   ;;  %s684_s13 = sphi %s732_s13, %s898_s13   ;;  %s680_s12 = sphi %s730_s12, %s897_s12  }
   0xa   : > { %p59_p0 = scmp.ne.s32.totalorder %s688_s14, %s684_s13  ;;  %p60_p1 = scmp.eq.s32.totalorder %s700_s17, 0 }
   0xb   : > { %p65_p2 = scmp.ne.s32.totalorder %s684_s13, %s680_s12  ;;  %p66_p3 = scmp.eq.s32.totalorder %s759_s18, 0 }
   0xc   : > { %p61_p4 = por %p60_p1, %p59_p0  ;;  %p427_p5 = scmp.ge.s32.totalorder %s700_s17, 1 }
   0xd   : > { %p770_p6 = por %p66_p3, %p65_p2  ;;  %p160_p7 = scmp.lt.s32.totalorder %s700_s17, 5 }
   0xe   : > { %s702_s22 = smov [#allocation7]   ;;  %p474_p10 = scmp.lt.s32.totalorder %s700_s17, 4 }
   0xf   : > { %s890_s20 = scalar_select %p770_p6, 1, 0 }
  0x10   : > { %p775_p8 = pnand %p427_p5, %p160_p7  ;;  %s175_s23 = sshll.u32 %s702_s22, 4  ;;  %s176_s23 = int_to_ptr.vmem [resolvable:$true] %s175_s23 }
  0x11   : > { %s186_s24 = sand.u32 1, %s688_s14   ;;  %p785_p12 = pnand %p474_p10, %p61_p4 }
  0x12   : > { %s891_s21 = scalar_select %p775_p8, 1, 0 }
  0x13   : > { %p462_p9 = pneg %p775_p8  ;;  %s543_s26 = scalar_lea.vmem %s176_s23, 128 }
  0x14   : > { %p544_p0 = scmp.ne.s32.totalorder %s176_s23, %s543_s26  ;;  %p551_p5 = scmp.lt.s32.totalorder %s176_s23, %s176_s23 }
  0x15   : > { %p463_p11 = pnand %p462_p9, %p66_p3  ;;  %p552_p7 = scmp.lt.s32.totalorder %s543_s26, %s543_s26 }
  0x17   : > { %p534_p13 = pneg %p463_p11  ;;  %p553_p6 = por %p552_p7, %p551_p5 }
  0x19   : > { %p546_p1 = pnand %p544_p0, %p534_p13 }
  0x1b   : > { %p547_p2 = pneg %p546_p1 }
  0x1d   : > { %p554_p8 = pnand %p553_p6, %p547_p2 }
  0x1f   : > { %557 = shalt.err (!%p554_p8)
}
  0x20   : > { %465 = dma.hbm_to_vmem [thread:$0]  (!%p463_p11), %s885_s2, 128, %s176_s23, [#allocation6]  }
  0x21   : > { %s35_s29 = sadd.s32 1, %s696_s16  ;;  %s793_s30 = sshll.u32 %s186_s24, 4 }
  0x22   : > { %p37_p4 = scmp.ge.s32.totalorder %s35_s29, 4  ;;  %s447_s4 = sshll.u32 %s696_s16, 8 }
  0x23   : > { %s190_s5 = scalar_lea.vmem [#allocation2], %s793_s30  ;;  %s893_s0 = sld [smem:[#allocation13_spill]] }
  0x24   : > { %s200_s6 = sshll.u32 %s190_s5, 4  ;;  %s903_s29 = smov (%p37_p4, %s35_s29), 0  ;;  %s201_s6 = int_to_ptr.vmem [resolvable:$true] %s200_s6 }
  0x25   : > { %s47_s10 = ssub.s32 %s696_s16, %s903_s29  ;;  %s187_s12 = scalar_lea.sflag [#allocation3], %s186_s24 }
  0x26   : > { %p806_p6 = scmp.eq.s32.totalorder %s47_s10, 0  ;;  %p560_p8 = pneg %p785_p12 }
  0x27   : > { %s571_s22 = scalar_lea.vmem %s201_s6, 256  ;;  %s703_s23 = smov [#allocation2]  }
  0x28   : > { %p572_p9 = scmp.ne.s32.totalorder %s201_s6, %s571_s22  ;;  %s576_s26 = sshll.u32 %s703_s23, 4  ;;  %s577_s26 = int_to_ptr.vmem [resolvable:$false] %s576_s26 }
  0x29   : > { %s199_s9 = scalar_lea.hbm %s893_s0, %s447_s4  ;;  %s578_s27 = scalar_lea.vmem %s577_s26, 512 }
  0x2a   : > { %p574_p10 = pnand %p572_p9, %p560_p8  ;;  %p579_p13 = scmp.lt.s32.totalorder %s201_s6, %s577_s26 }
  0x2b   : > { %p580_p0 = scmp.lt.s32.totalorder %s578_s27, %s571_s22 }
  0x2c   : > { %p575_p11 = pneg %p574_p10 }
  0x2d   : > { %p581_p1 = por %p580_p0, %p579_p13 }
  0x2f   : > { %p582_p2 = pnand %p581_p1, %p575_p11 }
  0x31   : > { %585 = shalt.err (!%p582_p2)
}
  0x32   : > { %s704_s28 = smov 128   ;;  %s705_s24 = smov 8  }
  0x33   : > { %469 = dma.hbm_to_vmem [thread:$0]  (!%p785_p12), %s199_s9, 256, %s201_s6, %s187_s12, %s704_s28, %s704_s28, %s705_s24  }
  0x34   : > { %s822_s5 = scalar_select %p806_p6, %s688_s14, %s52_s19  }
  0x35   : > { %s223_s10 = scalar_lea.hbm %s884_s1, %s447_s4  ;;  %s214_s22 = scalar_lea.vmem [#allocation5], %s793_s30 }
  0x36   : > { %s224_s23 = sshll.u32 %s214_s22, 4  ;;  %s210_s26 = sand.u32 1, %s700_s17   ;;  %s225_s23 = int_to_ptr.vmem [resolvable:$true] %s224_s23 }
  0x37   : > { %s211_s27 = scalar_lea.sflag [#allocation6], %s210_s26  ;;  %s599_s0 = scalar_lea.vmem %s225_s23, 256 }
  0x38   : > { %p600_p5 = scmp.ne.s32.totalorder %s225_s23, %s599_s0  ;;  %s706_s6 = smov [#allocation5]  }
  0x39   : > { %s604_s9 = sshll.u32 %s706_s6, 4  ;;  %s605_s9 = int_to_ptr.vmem [resolvable:$false] %s604_s9 }
  0x3a   : > { %p602_p7 = pnand %p600_p5, %p560_p8  ;;  %s606_s19 = scalar_lea.vmem %s605_s9, 512 }
  0x3b   : > { %p607_p6 = scmp.lt.s32.totalorder %s225_s23, %s605_s9  ;;  %p608_p9 = scmp.lt.s32.totalorder %s606_s19, %s599_s0 }
  0x3c   : > { %p603_p4 = pneg %p602_p7 }
  0x3d   : > { %p609_p10 = por %p608_p9, %p607_p6 }
  0x3f   : > { %p610_p11 = pnand %p609_p10, %p603_p4 }
  0x41   : > { %613 = shalt.err (!%p610_p11)
}
  0x42   : > { %472 = dma.hbm_to_vmem [thread:$0]  (!%p785_p12), %s223_s10, 256, %s225_s23, %s211_s27, %s704_s28, %s704_s28, %s705_s24  }
  0x43   : > { %p895_p13 = scmp.ne.s32.totalorder %s891_s21, 0 }
  0x44   : > { %s238_s30 = sand.u32 (!%p895_p13), 1, %s684_s13   ;;  %p896_p8 = scmp.ne.s32.totalorder (!%p895_p13), %s890_s20, 0 }
  0x45   : > { %236 = sbr.rel (%p895_p13) target bundleno = 102 (0x66), region = 32  ;;  %s437_s4 = sshll.u32 (!%p895_p13), %s238_s30, 4 }
  0x46   : > { %s239_s11 = scalar_lea.sflag (!%p895_p13), [#allocation3], %s238_s30  ;;  %s242_s12 = scalar_lea.vmem (!%p895_p13), [#allocation2], %s437_s4 }
  0x4a   : > { %663 = dma.done.wait (%p896_p8), %s239_s11, 256  }
  0x4b   : > { %665 = vsyncadd (%p896_p8), %s239_s11, 4294967040  ;;  %s247_s0 = sand.u32 1, %s759_s18   ;;  %s251_s25 = scalar_lea.vmem [#allocation5], %s437_s4 }
  0x4c   : > { %s248_s7 = scalar_lea.sflag [#allocation6], %s247_s0 }
  0x4d   : > { %667 = dma.done.wait (%p896_p8), %s248_s7, 256  }
  0x4e   : > { %669 = vsyncadd (%p896_p8), %s248_s7, 4294967040 }
  0x4f   : > { %671 = dma.done.wait (%p66_p3), [#allocation6], 128  }
  0x50   : > { %673 = vsyncadd (%p66_p3), [#allocation6], 4294967168  ;;  %p284_p12 = scmp.eq.s32.totalorder %s692_s15, 0 }
  0x51   : > { %v707_v0 = vmov (%p284_p12), 0.0  }
  0x52   : > { %289 = sbr.rel (!%p284_p12) target bundleno = 87 (0x57), region = 48  ;;  %290 = vst [vmem:[#allocation8] sm:$0xff] (%p284_p12), %v707_v0 }
  0x57 PF: > { %v291_v1 = vld [vmem:[#allocation7] sm:$0xff]  ;;  %v300_v4 = vld [vmem:[%s242_s12 + $0x8] sm:$0xff]  ;;  %v708_v6 = vmov 0.0   ;;  %s709_s15 = smov [#allocation8]   ;;  %p476_p3 = scmp.eq.s32.totalorder %s759_s18, 3 }
  0x58   : > { %v292_v2 = vld [vmem:[%s242_s12] sm:$0xff]  ;;  %v301_v5 = vld [vmem:[%s251_s25 + $0x8] sm:$0xff]  ;;  %vm303_vm4 = vcmp.ge.f32.partialorder %v300_v4, %v291_v1  ;;  %s320_s20 = sshll.u32 %s709_s15, 4  ;;  %s321_s20 = int_to_ptr.vmem [resolvable:$true] %s320_s20 }
  0x59   : > { %v293_v3 = vld [vmem:[%s251_s25] sm:$0xff]  ;;  %vm295_vm1 = vcmp.ge.f32.partialorder %v292_v2, %v291_v1  ;;  %vm302_vm3 = vcmp.ne.f32.partialorder %v301_v5, 0.0  ;;  %v308_v9 = vld [vmem:[#allocation8] sm:$0xff]  ;;  %s614_s21 = scalar_lea.vmem %s321_s20, 128  ;;  %p621_p5 = scmp.lt.s32.totalorder %s321_s20, %s321_s20 }
  0x5a   : > { %vm294_vm0 = vcmp.ne.f32.partialorder %v293_v3, 0.0  ;;  %vm304_vm5 = vmxor %vm303_vm4, %vm302_vm3  ;;  %p615_p0 = scmp.ne.s32.totalorder %s321_s20, %s614_s21  ;;  %p622_p7 = scmp.lt.s32.totalorder %s614_s21, %s614_s21 }
  0x5b   : > { %vm296_vm2 = vmxor %vm295_vm1, %vm294_vm0  ;;  %v442_v8 = vsel %vm304_vm5, 1.0, %v708_v6 }
  0x5c   : > { %v441_v7 = vsel %vm296_vm2, 1.0, %v708_v6  ;;  %p616_p1 = pnand %p615_p0, %p476_p3  ;;  %p623_p4 = por %p622_p7, %p621_p5 }
  0x5d   : > { %v307_v10 = vadd.f32 %v442_v8, %v441_v7 }
  0x5e   : > { %p617_p2 = pneg %p616_p1 }
  0x5f   : > { %v309_v11 = vadd.f32 %v308_v9, %v307_v10 }
  0x60   : > { %p624_p6 = pnand %p623_p4, %p617_p2 }
  0x61   : > { %310 = vst [vmem:[#allocation8] sm:$0xff] %v309_v11 }
  0x62   : > { %627 = shalt.err (!%p624_p6)
}
  0x63   : > { %459 = dma.vmem_to_hbm [thread:$0]  (%p476_p3), %s321_s20, 128, %s886_s3, [#allocation4]  }
  0x64   : > { %675 = dma.done.wait (%p476_p3), [#allocation4], 128  }
  0x65   : > { %677 = vsyncadd (%p476_p3), [#allocation4], 4294967168 }
  0x66 PF: > { %s20_s17 = sadd.s32 1, %s700_s17   ;;  %s897_s12 = smov %s684_s13 }
  0x67   : > { %p17_p9 = scmp.ge.s32.totalorder %s20_s17, 6   ;;  %s898_s13 = smov %s688_s14 }
  0x68   : > { %s899_s14 = smov %s822_s5  ;;  %s900_s15 = smov %s696_s16 }
  0x69   : > { %s901_s16 = smov %s903_s29  ;;  %19 = sbr.rel (!%p17_p9) target bundleno = 9 (0x9), region = 92 }
  0x6e   :  { %333 = vsyncpa [#allocation3], 1 }
  0x6f   :  { %335 = vsyncpa [#allocation3 + $0x1], 1 }
  0x70   :  { %336 = vsyncpa [#allocation6], 1 }
  0x71   :  { %338 = vsyncpa [#allocation6 + $0x1], 1 }
  0x72   :  { %339 = vsyncpa [#allocation4], 1 }
  0x73   :  { %341 = vsyncpa [#allocation4 + $0x1], 1 }

</bundles_post_ra>
